<compile_context>
chip_gen: v6e
topology: v6e:2x2x1
jax: 0.10.0
libtpu: 0.0.40
codegen_flags: <defaults>
</compile_context>

<pallas_src>
import functools

import jax
import jax.numpy as jnp
from jax import lax
from jax.experimental import pallas as pl
from jax.experimental.pallas import tpu as pltpu


def _round_up(x, m):
    return ((x + m - 1) // m) * m


def _vmem_limit_bytes():
    # ~3/4 of physical VMEM: 96 MiB on v5e/v6e (128 MiB), 48 MiB on v7x (64 MiB).
    try:
        cap = pltpu.get_tpu_info().vmem_capacity_bytes
    except Exception:
        cap = 64 * 1024 * 1024
    return int(cap) * 3 // 4


def _const_spec(shape, index_map):
    """BlockSpec for (mostly) grid-invariant operands: single pipeline buffer."""
    try:
        return pl.BlockSpec(shape, index_map, pipeline_mode=pl.Buffered(1))
    except Exception:  # older jax without pipeline_mode support
        return pl.BlockSpec(shape, index_map)


# --------------------------- Pass 1 kernel ----------------------------------
def _kv_kernel(x_ref, w_ref, b_ref, kv_ref, ks_ref, acc_ref, ksacc_ref,
               *, fused, D, ts, seq_len, masked):
    t = pl.program_id(2)
    nt = pl.num_programs(2)

    @pl.when(t == 0)
    def _():
        acc_ref[...] = jnp.zeros_like(acc_ref)
        ksacc_ref[...] = jnp.zeros_like(ksacc_ref)

    xb = x_ref[0]                                                    # (ts, D) bf16
    if fused:
        # D % 128 == 0: lane-aligned slices of the fused projection are free.
        kvp = jnp.dot(xb, w_ref[...],
                      preferred_element_type=jnp.float32) + b_ref[...]   # (ts, 2D) f32
        kp = jnp.maximum(kvp[:, :D], 0.0) + 1.0                      # k' (ts, D) f32
        v = kvp[:, D:]                                               # v  (ts, D) f32
    else:
        # D not lane-aligned: two dots avoid relayout copies of the 2D slab.
        kp = jnp.maximum(
            jnp.dot(xb, w_ref[0], preferred_element_type=jnp.float32) + b_ref[0],
            0.0) + 1.0
        v = jnp.dot(xb, w_ref[1], preferred_element_type=jnp.float32) + b_ref[1]

    if masked:  # static python branch: zero padded rows so they don't contribute
        tile = pl.program_id(1) * nt + t
        rows = tile * ts + lax.broadcasted_iota(jnp.int32, (ts, 1), 0)
        kp = jnp.where(rows < seq_len, kp, 0.0)

    # k'^T @ v: contract axis 0 of both operands -> no explicit transpose.
    # Single fused accumulate so Mosaic can use the v7x MRB in-place path.
    acc_ref[...] += lax.dot_general(
        kp.astype(jnp.bfloat16), v.astype(jnp.bfloat16),
        (((0,), (0,)), ((), ())), preferred_element_type=jnp.float32)
    ksacc_ref[...] += jnp.sum(kp, axis=0, keepdims=True)

    @pl.when(t == nt - 1)
    def _():
        kv_ref[0, 0] = acc_ref[...].astype(kv_ref.dtype)             # bf16 out
        ks_ref[0, 0] = ksacc_ref[...]                                # f32 out


# --------------------------- Pass 2 kernel ----------------------------------
def _out_kernel(x_ref, wq_ref, bq_ref, kv_ref, ks_ref, o_ref):
    xb = x_ref[0]                                                    # (ts, D) bf16
    q = jnp.dot(xb, wq_ref[...], preferred_element_type=jnp.float32) + bq_ref[...]
    qp = jnp.maximum(q, 0.0) + 1.0                                   # q' (ts, D) f32
    num = jnp.dot(qp.astype(jnp.bfloat16), kv_ref[0],                # kv already bf16
                  preferred_element_type=jnp.float32)                # (ts, D)
    # Denominator via VPU multiply + lane reduce instead of an N=1 matmul.
    den = jnp.maximum(jnp.sum(qp * ks_ref[0], axis=-1, keepdims=True), 1e-6)
    inv = pl.reciprocal(den, approx=True)                            # EUP slot
    o_ref[0] = (num * inv).astype(o_ref.dtype)


def linear_flex_attention(hidden_states, wq, bq, wk, bk, wv, bv,
                          *, seq_tile=512, seq_splits=None):
    """hidden_states: (B, S, D); w*: (D, D) PyTorch (out,in) layout; b*: (D,)."""
    B, S, D = hidden_states.shape
    out_dtype = hidden_states.dtype

    # Sequence tiling: multiple-of-8 tile, pad S up if it doesn't divide.
    ts = max(8, _round_up(min(seq_tile, S), 8))
    S_pad = _round_up(S, ts)
    nt = S_pad // ts
    masked = S_pad != S

    # Sequence-split parallel axis so both v7x TensorCores work when B == 1.
    if seq_splits is None:
        seq_splits = 2 if (B == 1 and nt % 2 == 0 and nt >= 2) else 1
    ns = seq_splits if (seq_splits >= 1 and nt % seq_splits == 0) else 1
    nt2 = nt // ns

    fused = (D % 128 == 0)

    # x is the only per-tile streamed operand and is read twice (pass 1 + 2):
    # cast to bf16 once here -> half the dominant HBM traffic.
    x = hidden_states.astype(jnp.bfloat16)
    if masked:
        x = jnp.pad(x, ((0, 0), (0, S_pad - S), (0, 0)))

    # Pre-transpose PyTorch (out,in) -> (in,out) once; bf16 MXU operands,
    # f32 biases / accumulation / epilogue.
    wq_t = wq.T.astype(jnp.bfloat16)                                   # (D, D)
    bq2 = bq.reshape(1, D).astype(jnp.float32)
    if fused:
        w_kv = jnp.concatenate([wk.T, wv.T], axis=1).astype(jnp.bfloat16)      # (D, 2D)
        b_kv = jnp.concatenate([bk, bv]).reshape(1, 2 * D).astype(jnp.float32)
        w_spec = _const_spec((D, 2 * D), lambda b, s, t: (0, 0))
        b_spec = _const_spec((1, 2 * D), lambda b, s, t: (0, 0))
    else:
        w_kv = jnp.stack([wk.T, wv.T]).astype(jnp.bfloat16)                    # (2, D, D)
        b_kv = jnp.stack([bk.reshape(1, D), bv.reshape(1, D)]).astype(jnp.float32)
        w_spec = _const_spec((2, D, D), lambda b, s, t: (0, 0, 0))
        b_spec = _const_spec((2, 1, D), lambda b, s, t: (0, 0, 0))

    vmem_limit = _vmem_limit_bytes()
    itemsize = jnp.dtype(out_dtype).itemsize

    # ---------------- Pass 1: kv = k'^T v  and  key_sum = sum_s k' ----------
    # TODO(synk): for D >= ~1536 on v7x, tile the kv/wv column dimension as an
    # extra grid axis instead of holding the full (D,2D) weight + (D,D) kv.
    kv_kernel = functools.partial(_kv_kernel, fused=fused, D=D, ts=ts,
                                  seq_len=S, masked=masked)
    p1_cost = pl.CostEstimate(
        flops=6 * B * S_pad * D * D, transcendentals=0,
        bytes_accessed=(B * S_pad * D * 2 + int(w_kv.size) * 2
                        + B * ns * D * D * 2 + B * ns * D * 4))

    kv_p, ks_p = pl.pallas_call(
        kv_kernel,
        out_shape=(jax.ShapeDtypeStruct((B, ns, D, D), jnp.bfloat16),
                   jax.ShapeDtypeStruct((B, ns, 1, D), jnp.float32)),
        grid_spec=pltpu.PrefetchScalarGridSpec(
            num_scalar_prefetch=0,
            grid=(B, ns, nt2),
            in_specs=[pl.BlockSpec((1, ts, D), lambda b, s, t: (b, s * nt2 + t, 0)),
                      w_spec, b_spec],
            out_specs=(pl.BlockSpec((1, 1, D, D), lambda b, s, t: (b, s, 0, 0)),
                       pl.BlockSpec((1, 1, 1, D), lambda b, s, t: (b, s, 0, 0))),
            scratch_shapes=[pltpu.VMEM((D, D), jnp.float32),
                            pltpu.VMEM((1, D), jnp.float32)]),
        compiler_params=pltpu.CompilerParams(
            dimension_semantics=("parallel", "parallel", "arbitrary"),
            vmem_limit_bytes=vmem_limit),
        cost_estimate=p1_cost,
    )(x, w_kv, b_kv)

    # Combine sequence-split partials (tiny: ns * D^2 per batch).
    if ns == 1:
        kv = kv_p.reshape(B, D, D)                 # bf16
        key_sum = ks_p.reshape(B, 1, D)            # f32
    else:
        kv = jnp.sum(kv_p.astype(jnp.float32), axis=1).astype(jnp.bfloat16)
        key_sum = jnp.sum(ks_p, axis=1)

    # ---------------- Pass 2: q' @ kv, normalize, store ---------------------
    p2_cost = pl.CostEstimate(
        flops=4 * B * S_pad * D * D, transcendentals=0,
        bytes_accessed=(B * S_pad * D * 2 + D * D * 2 + B * D * D * 2
                        + B * D * 4 + B * S_pad * D * itemsize))

    out = pl.pallas_call(
        _out_kernel,
        out_shape=jax.ShapeDtypeStruct((B, S_pad, D), out_dtype),
        grid_spec=pltpu.PrefetchScalarGridSpec(
            num_scalar_prefetch=0,
            grid=(B, nt),
            in_specs=[pl.BlockSpec((1, ts, D), lambda b, t: (b, t, 0)),
                      _const_spec((D, D), lambda b, t: (0, 0)),
                      _const_spec((1, D), lambda b, t: (0, 0)),
                      _const_spec((1, D, D), lambda b, t: (b, 0, 0)),
                      _const_spec((1, 1, D), lambda b, t: (b, 0, 0))],
            out_specs=pl.BlockSpec((1, ts, D), lambda b, t: (b, t, 0))),
        compiler_params=pltpu.CompilerParams(
            dimension_semantics=("parallel", "parallel"),
            vmem_limit_bytes=vmem_limit),
        cost_estimate=p2_cost,
    )(x, wq_t, bq2, kv, key_sum)

    if masked:
        out = out[:, :S, :]
    return out


def _reference(hidden_states, wq, bq, wk, bk, wv, bv):
    q = hidden_states @ wq.T + bq
    k = hidden_states @ wk.T + bk
    v = hidden_states @ wv.T + bv
    qp = jnp.maximum(q, 0.0) + 1.0
    kp = jnp.maximum(k, 0.0) + 1.0
    kv = jnp.einsum("bsd,bse->bde", kp, v)
    key_sum = kp.sum(axis=-2)
    numerator = jnp.einsum("bsd,bde->bse", qp, kv)
    denominator = jnp.maximum(
        jnp.einsum("bsd,bd->bs", qp, key_sum)[..., None], 1e-6)
    return numerator / denominator


if __name__ == "__main__":
    def _case(seed, B, S, D, seq_tile):
        key = jax.random.PRNGKey(seed)
        kx, kq, kk, kv_, kbq, kbk, kbv = jax.random.split(key, 7)
        bound = 1.0 / float(D) ** 0.5
        x = jax.random.normal(kx, (B, S, D), dtype=jnp.float32)
        wq = jax.random.uniform(kq, (D, D), jnp.float32, -bound, bound)
        wk = jax.random.uniform(kk, (D, D), jnp.float32, -bound, bound)
        wv = jax.random.uniform(kv_, (D, D), jnp.float32, -bound, bound)
        bq = jax.random.uniform(kbq, (D,), jnp.float32, -bound, bound)
        bk = jax.random.uniform(kbk, (D,), jnp.float32, -bound, bound)
        bv = jax.random.uniform(kbv, (D,), jnp.float32, -bound, bound)

        out = jax.block_until_ready(
            linear_flex_attention(x, wq, bq, wk, bk, wv, bv, seq_tile=seq_tile))
        ref = _reference(x, wq, bq, wk, bk, wv, bv)
        assert out.shape == (B, S, D)
        # bf16 x / weights / kv + approx reciprocal -> loosened tolerance vs f32 ref.
        err = float(jnp.max(jnp.abs(out - ref)))
        assert jnp.allclose(out, ref, atol=5e-2, rtol=5e-2), err

    # (B, S, D): split-projection path, single tile, no mask.
    _case(0, 2, 8, 32, 512)
    # Multi-tile reduction + sequence-split (ns=2) pass-1 parallel axis.
    _case(1, 1, 32, 32, 8)
    # Fused [K|V] projection (D % 128 == 0) + padded / masked sequence tail.
    _case(2, 1, 12, 128, 8)

    # TODO(synk): layer_past / use_cache / output_attentions branches of the
    # PyTorch forward are not translated (default inference path only).
    print("KERNEL_OK")
</pallas_src>

<mosaic_0001>
module attributes {stable_mosaic.version = 11 : i64} {
  func.func @_kv_kernel(%arg0: i32, %arg1: i32, %arg2: i32, %arg3: memref<1x8x32xbf16, #tpu.memory_space<vmem>>, %arg4: memref<2x32x32xbf16, #tpu.memory_space<vmem>>, %arg5: memref<2x1x32xf32, #tpu.memory_space<vmem>>, %arg6: memref<1x1x32x32xbf16, #tpu.memory_space<vmem>>, %arg7: memref<1x1x1x32xf32, #tpu.memory_space<vmem>>, %arg8: memref<32x32xf32, #tpu.memory_space<vmem>>, %arg9: memref<1x32xf32, #tpu.memory_space<vmem>>) attributes {dimension_semantics = [#tpu.dimension_semantics<parallel>, #tpu.dimension_semantics<parallel>, #tpu.dimension_semantics<arbitrary>], iteration_bounds = array<i64: 2, 1, 1>, scalar_prefetch = 0 : i64, scratch_operands = 2 : i64, tpu.core_type = #tpu.core_type<tc>, window_params = [{transform_indices = @transform_0, window_bounds = array<i64: 1, 8, 32>}, {pipeline_mode = #tpu.pipeline_mode<synchronous>, transform_indices = @transform_1, window_bounds = array<i64: 2, 32, 32>}, {pipeline_mode = #tpu.pipeline_mode<synchronous>, transform_indices = @transform_2, window_bounds = array<i64: 2, 1, 32>}, {transform_indices = @transform_3, window_bounds = array<i64: 1, 1, 32, 32>}, {transform_indices = @transform_4, window_bounds = array<i64: 1, 1, 1, 32>}]} {
    %c0_i32 = arith.constant 0 : i32
    %0 = arith.cmpi eq, %arg2, %c0_i32 : i32
    %1 = arith.extui %0 : i1 to i32
    %c0_i32_0 = arith.constant 0 : i32
    %2 = arith.cmpi ne, %1, %c0_i32_0 : i32
    scf.if %2 {
      %cst_29 = arith.constant 0.000000e+00 : f32
      %37 = vector.broadcast %cst_29 : f32 to vector<32x32xf32>
      %c0_30 = arith.constant 0 : index
      %c0_31 = arith.constant 0 : index
      %38 = vector.load %arg8[%c0_30, %c0_31] : memref<32x32xf32, #tpu.memory_space<vmem>>, vector<32x32xf32>
      tpu.vector_store %arg8[%c0_30, %c0_31], %37 {strides = array<i32>} : memref<32x32xf32, #tpu.memory_space<vmem>>, vector<32x32xf32>,
      %cst_32 = arith.constant 0.000000e+00 : f32
      %39 = vector.broadcast %cst_32 : f32 to vector<1x32xf32>
      %c0_33 = arith.constant 0 : index
      %c0_34 = arith.constant 0 : index
      %40 = vector.load %arg9[%c0_33, %c0_34] : memref<1x32xf32, #tpu.memory_space<vmem>>, vector<1x32xf32>
      tpu.vector_store %arg9[%c0_33, %c0_34], %39 {strides = array<i32>} : memref<1x32xf32, #tpu.memory_space<vmem>>, vector<1x32xf32>,
    } else {
    }
    %c0 = arith.constant 0 : index
    %c0_1 = arith.constant 0 : index
    %c0_2 = arith.constant 0 : index
    %3 = vector.load %arg3[%c0, %c0_1, %c0_2] : memref<1x8x32xbf16, #tpu.memory_space<vmem>>, vector<1x8x32xbf16>
    %4 = vector.shape_cast %3 : vector<1x8x32xbf16> to vector<8x32xbf16>
    %c0_3 = arith.constant 0 : index
    %c0_4 = arith.constant 0 : index
    %c0_5 = arith.constant 0 : index
    %5 = vector.load %arg4[%c0_3, %c0_4, %c0_5] : memref<2x32x32xbf16, #tpu.memory_space<vmem>>, vector<1x32x32xbf16>
    %6 = vector.shape_cast %5 : vector<1x32x32xbf16> to vector<32x32xbf16>
    %cst = arith.constant dense<0.000000e+00> : vector<8x32xf32>
    %7 = tpu.matmul %4, %6, %cst {dimension_numbers = #tpu.dot_dimension_numbers<[1], [0], [0], [1], [0, 0, 1, 1], [], []>} : vector<8x32xbf16>, vector<32x32xbf16>, vector<8x32xf32> -> vector<8x32xf32>
    %c0_6 = arith.constant 0 : index
    %c0_7 = arith.constant 0 : index
    %c0_8 = arith.constant 0 : index
    %8 = vector.load %arg5[%c0_6, %c0_7, %c0_8] : memref<2x1x32xf32, #tpu.memory_space<vmem>>, vector<1x1x32xf32>
    %9 = vector.shape_cast %8 : vector<1x1x32xf32> to vector<1x32xf32>
    %10 = vector.broadcast %9 : vector<1x32xf32> to vector<8x32xf32>
    %11 = arith.addf %7, %10 : vector<8x32xf32>
    %cst_9 = arith.constant 0.000000e+00 : f32
    %12 = vector.broadcast %cst_9 : f32 to vector<8x32xf32>
    %13 = arith.maximumf %11, %12 : vector<8x32xf32>
    %cst_10 = arith.constant 1.000000e+00 : f32
    %14 = vector.broadcast %cst_10 : f32 to vector<8x32xf32>
    %15 = arith.addf %13, %14 : vector<8x32xf32>
    %c1 = arith.constant 1 : index
    %c0_11 = arith.constant 0 : index
    %c0_12 = arith.constant 0 : index
    %16 = vector.load %arg4[%c1, %c0_11, %c0_12] : memref<2x32x32xbf16, #tpu.memory_space<vmem>>, vector<1x32x32xbf16>
    %17 = vector.shape_cast %16 : vector<1x32x32xbf16> to vector<32x32xbf16>
    %cst_13 = arith.constant dense<0.000000e+00> : vector<8x32xf32>
    %18 = tpu.matmul %4, %17, %cst_13 {dimension_numbers = #tpu.dot_dimension_numbers<[1], [0], [0], [1], [0, 0, 1, 1], [], []>} : vector<8x32xbf16>, vector<32x32xbf16>, vector<8x32xf32> -> vector<8x32xf32>
    %c1_14 = arith.constant 1 : index
    %c0_15 = arith.constant 0 : index
    %c0_16 = arith.constant 0 : index
    %19 = vector.load %arg5[%c1_14, %c0_15, %c0_16] : memref<2x1x32xf32, #tpu.memory_space<vmem>>, vector<1x1x32xf32>
    %20 = vector.shape_cast %19 : vector<1x1x32xf32> to vector<1x32xf32>
    %21 = vector.broadcast %20 : vector<1x32xf32> to vector<8x32xf32>
    %22 = arith.addf %18, %21 : vector<8x32xf32>
    %c0_17 = arith.constant 0 : index
    %c0_18 = arith.constant 0 : index
    %23 = vector.load %arg8[%c0_17, %c0_18] : memref<32x32xf32, #tpu.memory_space<vmem>>, vector<32x32xf32>
    %24 = arith.truncf %15 : vector<8x32xf32> to vector<8x32xbf16>
    %25 = arith.truncf %22 : vector<8x32xf32> to vector<8x32xbf16>
    %cst_19 = arith.constant dense<0.000000e+00> : vector<32x32xf32>
    %26 = tpu.matmul %24, %25, %cst_19 {dimension_numbers = #tpu.dot_dimension_numbers<[0], [0], [1], [1], [0, 1, 1, 1], [], []>} : vector<8x32xbf16>, vector<8x32xbf16>, vector<32x32xf32> -> vector<32x32xf32>
    %27 = arith.addf %23, %26 : vector<32x32xf32>
    %c0_20 = arith.constant 0 : index
    %c0_21 = arith.constant 0 : index
    %28 = vector.load %arg8[%c0_20, %c0_21] : memref<32x32xf32, #tpu.memory_space<vmem>>, vector<32x32xf32>
    tpu.vector_store %arg8[%c0_20, %c0_21], %27 {strides = array<i32>} : memref<32x32xf32, #tpu.memory_space<vmem>>, vector<32x32xf32>,
    %c0_22 = arith.constant 0 : index
    %c0_23 = arith.constant 0 : index
    %29 = vector.load %arg9[%c0_22, %c0_23] : memref<1x32xf32, #tpu.memory_space<vmem>>, vector<1x32xf32>
    %cst_24 = arith.constant dense<0.000000e+00> : vector<32xf32>
    %30 = vector.multi_reduction <add>, %15, %cst_24 [0] : vector<8x32xf32> to vector<32xf32>
    %31 = vector.shape_cast %30 : vector<32xf32> to vector<1x32xf32>
    %32 = arith.addf %29, %31 : vector<1x32xf32>
    %c0_25 = arith.constant 0 : index
    %c0_26 = arith.constant 0 : index
    %33 = vector.load %arg9[%c0_25, %c0_26] : memref<1x32xf32, #tpu.memory_space<vmem>>, vector<1x32xf32>
    tpu.vector_store %arg9[%c0_25, %c0_26], %32 {strides = array<i32>} : memref<1x32xf32, #tpu.memory_space<vmem>>, vector<1x32xf32>,
    %c0_i32_27 = arith.constant 0 : i32
    %34 = arith.cmpi eq, %arg2, %c0_i32_27 : i32
    %35 = arith.extui %34 : i1 to i32
    %c0_i32_28 = arith.constant 0 : i32
    %36 = arith.cmpi ne, %35, %c0_i32_28 : i32
    scf.if %36 {
      %c0_29 = arith.constant 0 : index
      %c0_30 = arith.constant 0 : index
      %37 = vector.load %arg8[%c0_29, %c0_30] : memref<32x32xf32, #tpu.memory_space<vmem>>, vector<32x32xf32>
      %38 = arith.truncf %37 : vector<32x32xf32> to vector<32x32xbf16>
      %c0_31 = arith.constant 0 : index
      %c0_32 = arith.constant 0 : index
      %c0_33 = arith.constant 0 : index
      %c0_34 = arith.constant 0 : index
      %39 = vector.load %arg6[%c0_31, %c0_32, %c0_33, %c0_34] : memref<1x1x32x32xbf16, #tpu.memory_space<vmem>>, vector<1x1x32x32xbf16>
      %40 = vector.shape_cast %39 : vector<1x1x32x32xbf16> to vector<32x32xbf16>
      %41 = vector.shape_cast %38 : vector<32x32xbf16> to vector<1x1x32x32xbf16>
      tpu.vector_store %arg6[%c0_31, %c0_32, %c0_33, %c0_34], %41 {strides = array<i32>} : memref<1x1x32x32xbf16, #tpu.memory_space<vmem>>, vector<1x1x32x32xbf16>,
      %c0_35 = arith.constant 0 : index
      %c0_36 = arith.constant 0 : index
      %42 = vector.load %arg9[%c0_35, %c0_36] : memref<1x32xf32, #tpu.memory_space<vmem>>, vector<1x32xf32>
      %c0_37 = arith.constant 0 : index
      %c0_38 = arith.constant 0 : index
      %c0_39 = arith.constant 0 : index
      %c0_40 = arith.constant 0 : index
      %43 = vector.load %arg7[%c0_37, %c0_38, %c0_39, %c0_40] : memref<1x1x1x32xf32, #tpu.memory_space<vmem>>, vector<1x1x1x32xf32>
      %44 = vector.shape_cast %43 : vector<1x1x1x32xf32> to vector<1x32xf32>
      %45 = vector.shape_cast %42 : vector<1x32xf32> to vector<1x1x1x32xf32>
      tpu.vector_store %arg7[%c0_37, %c0_38, %c0_39, %c0_40], %45 {strides = array<i32>} : memref<1x1x1x32xf32, #tpu.memory_space<vmem>>, vector<1x1x1x32xf32>,
    } else {
    }
    return
  }
  func.func @transform_0(%arg0: i32, %arg1: i32, %arg2: i32) -> (i32, i32, i32) {
    %c1_i32 = arith.constant 1 : i32
    %0 = arith.muli %arg1, %c1_i32 : i32
    %1 = arith.addi %0, %arg2 : i32
    %c0_i32 = arith.constant 0 : i32
    %c0_i32_0 = arith.constant 0 : i32
    return %arg0, %1, %c0_i32 : i32, i32, i32
  }
  func.func @transform_1(%arg0: i32, %arg1: i32, %arg2: i32) -> (i32, i32, i32) {
    %c0_i32 = arith.constant 0 : i32
    %c0_i32_0 = arith.constant 0 : i32
    %c0_i32_1 = arith.constant 0 : i32
    %c0_i32_2 = arith.constant 0 : i32
    return %c0_i32, %c0_i32_0, %c0_i32_1 : i32, i32, i32
  }
  func.func @transform_2(%arg0: i32, %arg1: i32, %arg2: i32) -> (i32, i32, i32) {
    %c0_i32 = arith.constant 0 : i32
    %c0_i32_0 = arith.constant 0 : i32
    %c0_i32_1 = arith.constant 0 : i32
    %c0_i32_2 = arith.constant 0 : i32
    return %c0_i32, %c0_i32_0, %c0_i32_1 : i32, i32, i32
  }
  func.func @transform_3(%arg0: i32, %arg1: i32, %arg2: i32) -> (i32, i32, i32, i32) {
    %c0_i32 = arith.constant 0 : i32
    %c0_i32_0 = arith.constant 0 : i32
    %c0_i32_1 = arith.constant 0 : i32
    return %arg0, %arg1, %c0_i32, %c0_i32_0 : i32, i32, i32, i32
  }
  func.func @transform_4(%arg0: i32, %arg1: i32, %arg2: i32) -> (i32, i32, i32, i32) {
    %c0_i32 = arith.constant 0 : i32
    %c0_i32_0 = arith.constant 0 : i32
    %c0_i32_1 = arith.constant 0 : i32
    return %arg0, %arg1, %c0_i32, %c0_i32_0 : i32, i32, i32, i32
  }
}

</mosaic_0001>

<bundles_post_ra>
// kernel: tpu_custom_call.1
= control target key start
LH: loop header
LB: loop body
LE: loop exit
PB: predicated region body
PF: predicated region fallthrough
CT: control target
= control target key end

     0   :  { %s1295_s0 = inlined_call_operand.hbm [shape: bf16[2,8,32], index: 0, kind: input, shape index: {}]   ;;  %s1296_s1 = inlined_call_operand.hbm [shape: bf16[2,32,32], index: 1, kind: input, shape index: {}]   ;;  %s1297_s2 = inlined_call_operand.vmem [shape: f32[2,1,32], index: 2, kind: input, shape index: {}]   ;;  %s1298_s3 = inlined_call_operand.hbm [shape: bf16[2,1,32,32], index: 3, kind: output, shape index: {0}]   ;;  %s1299_s4 = inlined_call_operand.hbm [shape: f32[2,1,1,32], index: 4, kind: output, shape index: {1}]  }
   0x1   :  { %1301 = sst [smem:[#allocation16_spill]] %s1296_s1 }
   0x2   :  { %10 = vsyncpa [#allocation5], 0 }
   0x3   :  { %12 = vsyncpa [#allocation5 + $0x1], 0 }
   0x4   :  { %13 = vsyncpa [#allocation8], 0 }
   0x5   :  { %14 = vsyncpa [#allocation6], 0 }
   0x6   :  { %16 = vsyncpa [#allocation6 + $0x1], 0 }
   0x7   :  { %17 = vsyncpa [#allocation11], 0 }
   0x8   :  { %19 = vsyncpa [#allocation11 + $0x1], 0  ;;  %s1071_s15 = smov 0   ;;  %s1073_s16 = smov 0  }
   0x9   :  { %s1075_s17 = smov 0   ;;  %s1077_s18 = smov 0  }
   0xa   :  { %s1079_s19 = smov 0   ;;  %s1081_s20 = smov 0  }
   0xb LB: > { %s708_s21 = sadd.s32 4294967295, %s1034_s20   ;;  %s709_s22 = sadd.s32 4294967294, %s1034_s20   ;;  %s1034_s20 = sphi %s1081_s20, %s25_s20   ;;  %s1030_s19 = sphi %s1079_s19, %s1319_s19   ;;  %s1026_s18 = sphi %s1077_s18, %s1318_s18   ;;  %s1022_s17 = sphi %s1075_s17, %s1317_s17   ;;  %s1018_s16 = sphi %s1073_s16, %s1316_s16   ;;  %s1014_s15 = sphi %s1071_s15, %s1315_s15  }
   0xc   : > { %p68_p0 = scmp.ne.s32.totalorder %s1018_s16, %s1014_s15  ;;  %p1105_p1 = scmp.eq.s32.totalorder %s708_s21, 0 }
   0xd   : > { %p1109_p2 = scmp.eq.s32.totalorder %s708_s21, 1  ;;  %p142_p3 = scmp.eq.s32.totalorder %s709_s22, 1 }
   0xe   : > { %p1115_p4 = por %p1105_p1, %p68_p0  ;;  %p710_p5 = scmp.ge.s32.totalorder %s1034_s20, 1 }
   0xf   : > { %p1120_p6 = por %p142_p3, %p68_p0  ;;  %p177_p7 = scmp.lt.s32.totalorder %s1034_s20, 3 }
  0x10   : > { %s1304_s25 = scalar_select %p1115_p4, 1, 0 }
  0x11   : > { %s1305_s26 = scalar_select %p1120_p6, 1, 0 }
  0x12   : > { %p1125_p8 = pnand %p710_p5, %p177_p7  ;;  %s1036_s28 = smov [#allocation7]  }
  0x13   : > { %s189_s29 = sshll.u32 %s1036_s28, 4  ;;  %s44_s5 = sadd.s32 1, %s1030_s19  ;;  %s190_s29 = int_to_ptr.vmem [resolvable:$true] %s189_s29 }
  0x14   : > { %p787_p9 = pneg %p1125_p8  ;;  %s877_s6 = scalar_lea.vmem %s190_s29, 512 }
  0x15   : > { %p878_p13 = scmp.ne.s32.totalorder %s190_s29, %s877_s6  ;;  %p885_p5 = scmp.lt.s32.totalorder %s190_s29, %s190_s29 }
  0x16   : > { %p1134_p11 = pnand %p787_p9, %p1105_p1  ;;  %p886_p7 = scmp.lt.s32.totalorder %s877_s6, %s877_s6 }
  0x18   : > { %p868_p12 = pneg %p1134_p11  ;;  %p887_p6 = por %p886_p7, %p885_p5 }
  0x1a   : > { %p880_p0 = pnand %p878_p13, %p868_p12 }
  0x1c   : > { %p881_p3 = pneg %p880_p0 }
  0x1e   : > { %p888_p4 = pnand %p887_p6, %p881_p3 }
  0x20   : > { %891 = shalt.err (!%p888_p4)
}
  0x21   : > { %s1037_s7 = smov 64   ;;  %s1038_s8 = smov 4  }
  0x22   : > { %s1308_s1 = sld [smem:[#allocation16_spill]]  ;;  %p46_p6 = scmp.ge.s32.totalorder %s44_s5, 2 }
  0x23   : > { %s55_s11 = sadd.s32 1, %s1022_s17  ;;  %p62_p4 = scmp.ne.s32.totalorder %s1022_s17, %s1018_s16 }
  0x24   : > { %p63_p9 = scmp.eq.s32.totalorder %s1034_s20, 0  ;;  %s1321_s5 = smov (%p46_p6, %s44_s5), 0 }
  0x25   : > { %p1158_p13 = por %p1109_p2, %p62_p4  ;;  %s50_s14 = ssub.s32 %s1030_s19, %s1321_s5 }
  0x26   : > { %p1152_p12 = por %p63_p9, %p62_p4  ;;  %p803_p0 = scmp.lt.s32.totalorder %s1034_s20, 2 }
  0x27   : > { %s206_s21 = sand.u32 1, %s1022_s17  }
  0x28   : > { %790 = dma.hbm_to_vmem [thread:$0]  (!%p1134_p11), %s1308_s1, 512, %s190_s29, [#allocation8], %s1037_s7, %s1037_s7, %s1038_s8  }
  0x29   : > { %p53_p11 = scmp.eq.s32.totalorder %s50_s14, 0  ;;  %s713_s22 = sshll.u32 %s206_s21, 2 }
  0x2a   : > { %s714_s29 = sshll.u32 %s1030_s19, 6  ;;  %s210_s8 = scalar_lea.vmem [#allocation4], %s713_s22 }
  0x2b   : > { %s1167_s28 = scalar_select %p53_p11, %s1022_s17, %s55_s11  }
  0x2c   : > { %s217_s7 = scalar_lea.hbm %s1295_s0, %s714_s29  ;;  %s219_s9 = sshll.u32 %s210_s8, 4  ;;  %s220_s9 = int_to_ptr.vmem [resolvable:$true] %s219_s9 }
  0x2d   : > { %p1175_p2 = pnand %p803_p0, %p1152_p12  ;;  %s207_s10 = scalar_lea.sflag [#allocation5], %s206_s21 }
  0x2e   : > { %s905_s14 = scalar_lea.vmem %s220_s9, 64  ;;  %s1039_s11 = smov [#allocation4]  }
  0x2f   : > { %p894_p3 = pneg %p1175_p2  ;;  %p906_p5 = scmp.ne.s32.totalorder %s220_s9, %s905_s14 }
  0x30   : > { %s910_s1 = sshll.u32 %s1039_s11, 4  ;;  %s911_s1 = int_to_ptr.vmem [resolvable:$false] %s910_s1 }
  0x31   : > { %p908_p7 = pnand %p906_p5, %p894_p3  ;;  %s912_s29 = scalar_lea.vmem %s911_s1, 128 }
  0x32   : > { %p913_p4 = scmp.lt.s32.totalorder %s220_s9, %s911_s1  ;;  %p914_p9 = scmp.lt.s32.totalorder %s912_s29, %s905_s14 }
  0x33   : > { %p909_p6 = pneg %p908_p7 }
  0x34   : > { %p915_p11 = por %p914_p9, %p913_p4 }
  0x36   : > { %p916_p10 = pnand %p915_p11, %p909_p6 }
  0x38   : > { %919 = shalt.err (!%p916_p10)
}
  0x39   : > { %794 = dma.hbm_to_vmem [thread:$0]  (!%p1175_p2), %s217_s7, 64, %s220_s9, %s207_s10  }
  0x3a   : > { %228 = sbr.rel (%p1125_p8) target bundleno = 605 (0x25d), region = 32  ;;  %s1186_s12 = sand.u32 (!%p1125_p8), 1, %s1018_s16  }
  0x3b   : > { %s716_s21 = sshll.u32 (!%p1125_p8), %s1186_s12, 2  ;;  %s231_s22 = scalar_lea.sflag (!%p1125_p8), [#allocation5], %s1186_s12 }
  0x3c   : > { %s234_s30 = scalar_lea.vmem (!%p1125_p8), [#allocation4], %s716_s21  ;;  %p1312_p12 = scmp.ne.s32.totalorder (!%p1125_p8), %s1304_s25, 0 }
  0x3f   : > { %997 = dma.done.wait (%p1312_p12), %s231_s22, 64  }
  0x40   : > { %999 = vsyncadd (%p1312_p12), %s231_s22, 4294967232 }
  0x41   : > { %1001 = dma.done.wait (%p1105_p1), [#allocation8], 512  }
  0x42   : > { %1003 = vsyncadd (%p1105_p1), [#allocation8], 4294966784  ;;  %vm273_vm0 = vcmask 261120   ;;  %v1040_v0 = vmov 0.0   ;;  %vm1041_vm1 = vmmov 0   ;;  %v862_v1 = vld [vmem:[#allocation7 + $0x8] sm:$0xff]  }
  0x43   : > { %754 = vmatprep.subr.bf16.mxu0 %v1040_v0  ;;  %758 = vmatprep.mubr.msk.bf16.mxu0 %vm1041_vm1, %v1040_v0  ;;  %274 = vst.msk [vmem:[#allocation2] sm:$0xff] %vm273_vm0, %v1040_v0  ;;  %275 = vst.msk [vmem:[#allocation2 + $0x8] sm:$0xff] %vm273_vm0, %v1040_v0  ;;  %v863_v2 = vld [vmem:[#allocation7] sm:$0xff]   ;;  %v864_v3 = vld [vmem:[#allocation7 + $0x18] sm:$0xff]   ;;  %vm278_vm2 = vcmask 253952   ;;  %vm444_vm3 = vcmask 1043456  }
  0x44   : > { %276 = vst.msk [vmem:[#allocation2 + $0x10] sm:$0xff] %vm273_vm0, %v1040_v0  ;;  %277 = vst.msk [vmem:[#allocation2 + $0x18] sm:$0xff] %vm273_vm0, %v1040_v0  ;;  %762 = vmatprep.subr.bf16.mxu1 %v1040_v0  ;;  %766 = vmatprep.mubr.msk.bf16.mxu1 %vm1041_vm1, %v1040_v0  ;;  %v865_v4 = vld [vmem:[#allocation7 + $0x10] sm:$0xff]   ;;  %v280_v5 = vld [vmem:[%s234_s30] sm:$0xf]  ;;  %s266_s6 = scalar_lea.vmem [#allocation10], %s1186_s12 }
  0x45   : > { %755 = vmatpush3.bf16.msra.mxu0 %v862_v1  ;;  %763 = vmatpush3.bf16.msra.mxu1 %v864_v3  ;;  %279 = vst.msk [vmem:[#allocation3] sm:$0x1] %vm278_vm2, %v1040_v0  ;;  %v719_v6 = vld [vmem:[%s1297_s2] ss:$0 sm:$0xff]  ;;  %v724_v9 = vld [vmem:[%s1297_s2 + $0x1] ss:$0 sm:$0xff] }
  0x46   : > { %756 = vmatprep.subr.bf16.mxu0 %v1040_v0  ;;  %764 = vmatprep.subr.bf16.mxu1 %v1040_v0  ;;  %vm437_vm4 = vcmask 64512   ;;  %s737_s7 = sshll.u32 %s1026_s18, 4  ;;  %s583_s8 = sshll.u32 %s266_s6, 4  ;;  %s584_s8 = int_to_ptr.vmem [resolvable:$true] %s583_s8 }
  0x47   : > { %s581_s10 = scalar_lea.hbm %s1299_s4, %s737_s7  ;;  %s552_s14 = scalar_lea.sflag [#allocation11], %s1186_s12 }
  0x48   : > { %s920_s11 = scalar_lea.vmem %s584_s8, 16  ;;  %s1042_s29 = smov [#allocation10]  }
  0x49   : > { %757 = vmatpush3.bf16.msra.mxu0 %v863_v2  ;;  %765 = vmatpush3.bf16.msra.mxu1 %v865_v4  ;;  %p921_p1 = scmp.ne.s32.totalorder %s584_s8, %s920_s11  ;;  %s924_s21 = sshll.u32 %s1042_s29, 4  ;;  %s925_s21 = int_to_ptr.vmem [resolvable:$false] %s924_s21 }
  0x4a   : > { %s926_s22 = scalar_lea.vmem %s925_s21, 32  ;;  %p927_p0 = scmp.lt.s32.totalorder %s584_s8, %s925_s21 }
  0x4b   : > { %p922_p8 = pnand %p921_p1, %p1158_p13  ;;  %p928_p2 = scmp.lt.s32.totalorder %s926_s22, %s920_s11 }
  0x4c   : > { %759 = vmatmul.mubr.msk.bf16.vlgmr.msra.gmra.mxu0 %vm273_vm0, %v280_v5  ;;  %767 = vmatmul.mubr.msk.bf16.vlgmr.msra.gmra.mxu1 %vm273_vm0, %v280_v5  ;;  %v505_v29 = vld [vmem:[#allocation3] sm:$0x1] }
  0x4d   : > { %p923_p10 = pneg %p922_p8  ;;  %p929_p3 = por %p928_p2, %p927_p0 }
  0x4f   : > { %p930_p5 = pnand %p929_p3, %p923_p10 }
 0x10c   : > { %v342_v7 = vpop.f32.mrf.mxu0  ;;  %v409_v12 = vpop.f32.mrf.mxu1 }
 0x10d   : > { %v343_v8 = vadd.f32 %v719_v6, %v342_v7  ;;  %v410_v14 = vadd.f32 %v724_v9, %v409_v12 }
 0x10e   : > { %v760_v10 = vpop.f32.mrf.mxu0  ;;  %v768_v16 = vpop.f32.mrf.mxu1 }
 0x10f   : > { %v348_v11 = vmax.f32 %v343_v8, 0.0  ;;  %v420_v18 = vpack.c.bf16 %v410_v14, %v410_v14 }
 0x110   : > { %v345_v13 = vpop.f32.mrf.mxu0  ;;  %v412_v21 = vpop.f32.mrf.mxu1 }
 0x111   : > { %v349_v15 = vadd.f32 1.0, %v348_v11  ;;  %v446_v23 = vsel %vm444_vm3, %v420_v18, 0  ;;  %776 = vmatprep.subr.msk.bf16.mxu0 %vm444_vm3, %v420_v18 }
 0x112   : > { %v761_v17 = vpop.f32.mrf.mxu0  ;;  %v769_v24 = vpop.f32.mrf.mxu1  ;;  %771 = vmatpush3.bf16.msra.mxu0 %v446_v23 }
 0x113   : > { %v506_v19 = vsel %vm273_vm0, %v349_v15, 0.0  ;;  %v419_v20 = vpack.c.bf16 %v349_v15, %v349_v15 }
 0x114   : > { %v507_v22 = vrot.slane %v506_v19, 4 }
 0x115   : > { %421 = vxpose.xlu0.c.b16.start.end [1/1] (short) (narrow) %v419_v20, 32 }
 0x116   : > { %v508_v25 = vadd.f32 %v507_v22, %v506_v19 }
 0x118   : > { %v509_v26 = vrot.slane %v508_v25, 2 }
 0x11a   : > { %v510_v27 = vadd.f32 %v509_v26, %v508_v25 }
 0x11c   : > { %v511_v28 = vrot.slane %v510_v27, 1 }
 0x11e   : > { %v512_v30 = vadd.f32 %v511_v28, %v510_v27 }
 0x120   : > { %v513_v31 = vadd.f32 %v512_v30, %v505_v29 }
 0x122   : > { %515 = vst.msk [vmem:[#allocation3] sm:$0x1] %vm278_vm2, %v513_v31 }
 0x129   : > { %v544_v32 = vld [vmem:[#allocation3] sm:$0x1] }
 0x12a   : > { %545 = vst.msk [vmem:[%s266_s6] sm:$0x1] %vm278_vm2, %v544_v32 }
 0x177   : > { %v429_v33 = vpop.trf.xlu0 }
 0x178   : > { %772 = vmatprep.mubr.msk.bf16.mxu0 %vm437_vm4, %v429_v33 }
 0x17b   : > { %v430_v34 = vpop.trf.xlu0 }
 0x17c   : > { %773 = vmatmul.mubr.msk.bf16.vlgmr.msra.gmra.mxu0 %vm437_vm4, %v430_v34 }
 0x17d   : > { %933 = shalt.err (!%p930_p5)
}
 0x17e   : > { %s934_s30 = scalar_lea.hbm %s581_s10, 16  ;;  %s938_s25 = scalar_lea.hbm %s1299_s4, 32 }
 0x17f   : > { %p935_p7 = scmp.ne.s32.totalorder %s581_s10, %s934_s30  ;;  %p939_p9 = scmp.lt.s32.totalorder %s581_s10, %s1299_s4 }
 0x180   : > { %p940_p11 = scmp.lt.s32.totalorder %s938_s25, %s934_s30 }
 0x181   : > { %p936_p6 = pnand %p935_p7, %p1158_p13 }
 0x182   : > { %p941_p12 = por %p940_p11, %p939_p9 }
 0x183   : > { %p937_p4 = pneg %p936_p6 }
 0x185   : > { %p942_p1 = pnand %p941_p12, %p937_p4 }
 0x187   : > { %945 = shalt.err (!%p942_p1)
}
 0x188   : > { %784 = dma.vmem_to_hbm [thread:$0]  (%p1158_p13), %s584_s8, 16, %s581_s10, %s552_s14   ;;  %v417_v35 = vld [vmem:[#allocation2 + $0x10] sm:$0xff]  ;;  %v415_v37 = vld [vmem:[#allocation2] sm:$0xff]  ;;  %v418_v40 = vld [vmem:[#allocation2 + $0x18] sm:$0xff]  ;;  %vm539_vm5 = vcmask 257024  }
 0x189   : > { %v416_v43 = vld [vmem:[#allocation2 + $0x8] sm:$0xff]  ;;  %s718_s7 = sshll.u32 %s1186_s12, 4  ;;  %s744_s9 = sshll.u32 %s1026_s18, 8 }
 0x18a   : > { %s260_s8 = scalar_lea.vmem [#allocation9], %s718_s7  ;;  %s1243_s11 = scalar_lea.hbm %s1298_s3, %s744_s9 }
 0x18b   : > { %s566_s24 = sshll.u32 %s260_s8, 4  ;;  %s547_s18 = scalar_lea.sflag [#allocation6], %s1186_s12  ;;  %s1245_s24 = int_to_ptr.vmem [resolvable:$true] %s566_s24 }
 0x18c   : > { %s946_s29 = scalar_lea.vmem %s1245_s24, 256  ;;  %s1043_s21 = smov [#allocation9]  }
 0x18d   : > { %p947_p8 = scmp.ne.s32.totalorder %s1245_s24, %s946_s29  ;;  %s950_s22 = sshll.u32 %s1043_s21, 4  ;;  %s951_s22 = int_to_ptr.vmem [resolvable:$false] %s950_s22 }
 0x18e   : > { %s952_s30 = scalar_lea.vmem %s951_s22, 512  ;;  %p953_p2 = scmp.lt.s32.totalorder %s1245_s24, %s951_s22 }
 0x18f   : > { %p948_p10 = pnand %p947_p8, %p1158_p13  ;;  %p954_p3 = scmp.lt.s32.totalorder %s952_s30, %s946_s29 }
 0x191   : > { %p949_p0 = pneg %p948_p10  ;;  %p955_p5 = por %p954_p3, %p953_p2 }
 0x193   : > { %p956_p7 = pnand %p955_p5, %p949_p0 }
 0x23c   : > { %v774_v36 = vpop.f32.mrf.mxu0 }
 0x23d   : > { %v499_v38 = vadd.f32 %v774_v36, %v417_v35 }
 0x23e   : > { %v482_v39 = vpop.f32.mrf.mxu0 }
 0x23f   : > { %503 = vst.msk [vmem:[#allocation2 + $0x10] sm:$0xff] %vm273_vm0, %v499_v38  ;;  %v497_v41 = vadd.f32 %v482_v39, %v415_v37 }
 0x240   : > { %v775_v42 = vpop.f32.mrf.mxu0 }
 0x241   : > { %501 = vst.msk [vmem:[#allocation2] sm:$0xff] %vm273_vm0, %v497_v41  ;;  %v500_v44 = vadd.f32 %v775_v42, %v418_v40 }
 0x242   : > { %v485_v45 = vpop.f32.mrf.mxu0 }
 0x243   : > { %504 = vst.msk [vmem:[#allocation2 + $0x18] sm:$0xff] %vm273_vm0, %v500_v44  ;;  %v498_v46 = vadd.f32 %v485_v45, %v416_v43 }
 0x245   : > { %502 = vst.msk [vmem:[#allocation2 + $0x8] sm:$0xff] %vm273_vm0, %v498_v46 }
 0x246   : > { %v521_v47 = vld [vmem:[#allocation2 + $0x10] sm:$0xff] }
 0x247   : > { %v742_v48 = vpack.c.bf16 %v521_v47, %v521_v47 }
 0x248   : > { %v519_v49 = vld [vmem:[#allocation2] sm:$0xff] }
 0x249   : > { %v740_v50 = vpack.c.bf16 %v519_v49, %v519_v49  ;;  %542 = vst.msk [vmem:[%s260_s8 + $0x8] sm:$0xf] %vm539_vm5, %v742_v48 }
 0x24a   : > { %v522_v51 = vld [vmem:[#allocation2 + $0x18] sm:$0xff] }
 0x24b   : > { %v743_v52 = vpack.c.bf16 %v522_v51, %v522_v51  ;;  %540 = vst.msk [vmem:[%s260_s8] sm:$0xf] %vm539_vm5, %v740_v50 }
 0x24c   : > { %v520_v53 = vld [vmem:[#allocation2 + $0x8] sm:$0xff] }
 0x24d   : > { %v741_v54 = vpack.c.bf16 %v520_v53, %v520_v53  ;;  %543 = vst.msk [vmem:[%s260_s8 + $0xc] sm:$0xf] %vm539_vm5, %v743_v52 }
 0x24f   : > { %541 = vst.msk [vmem:[%s260_s8 + $0x4] sm:$0xf] %vm539_vm5, %v741_v54 }
 0x250   : > { %959 = shalt.err (!%p956_p7)
}
 0x251   : > { %s960_s1 = scalar_lea.hbm %s1243_s11, 256  ;;  %s964_s27 = scalar_lea.hbm %s1298_s3, 512 }
 0x252   : > { %p961_p6 = scmp.ne.s32.totalorder %s1243_s11, %s960_s1  ;;  %p965_p11 = scmp.lt.s32.totalorder %s1243_s11, %s1298_s3 }
 0x253   : > { %p966_p12 = scmp.lt.s32.totalorder %s964_s27, %s960_s1 }
 0x254   : > { %p962_p4 = pnand %p961_p6, %p1158_p13 }
 0x255   : > { %p967_p1 = por %p966_p12, %p965_p11 }
 0x256   : > { %p963_p9 = pneg %p962_p4 }
 0x258   : > { %p968_p8 = pnand %p967_p1, %p963_p9 }
 0x25a   : > { %971 = shalt.err (!%p968_p8)
}
 0x25b   : > { %s1044_s8 = smov 64   ;;  %s1045_s9 = smov 4  }
 0x25c   : > { %783 = dma.vmem_to_hbm [thread:$0]  (%p1158_p13), %s1245_s24, 256, %s1243_s11, %s547_s18, %s1044_s8, %s1044_s8, %s1045_s9  }
 0x25d PF: > { %s595_s10 = sand.u32 1, %s1014_s15   ;;  %p1313_p10 = scmp.ne.s32.totalorder %s1305_s26, 0 }
 0x25e   : > { %p1314_p0 = scmp.ge.s32.totalorder %s1034_s20, 2  ;;  %s596_s14 = scalar_lea.sflag [#allocation6], %s595_s10 }
 0x260   : > { %p796_p2 = pnand %p1314_p0, %p1313_p10 }
 0x262   : > { %p797_p3 = pneg %p796_p2 }
 0x264   : > { %1005 = dma.done.wait (%p797_p3), %s596_s14, 256  }
 0x265   : > { %1007 = vsyncadd (%p797_p3), %s596_s14, 4294967040  ;;  %s605_s29 = scalar_lea.sflag [#allocation11], %s595_s10 }
 0x266   : > { %1009 = dma.done.wait (%p797_p3), %s605_s29, 16  }
 0x267   : > { %1011 = vsyncadd (%p797_p3), %s605_s29, 4294967280  ;;  %s25_s20 = sadd.s32 1, %s1034_s20   ;;  %s1315_s15 = smov %s1018_s16 }
 0x268   : > { %p22_p5 = scmp.ge.s32.totalorder %s25_s20, 4   ;;  %s1316_s16 = smov %s1022_s17 }
 0x269   : > { %s1317_s17 = smov %s1167_s28  ;;  %s1318_s18 = smov %s1030_s19 }
 0x26a   : > { %s1319_s19 = smov %s1321_s5  ;;  %24 = sbr.rel (!%p22_p5) target bundleno = 11 (0xb), region = 108 }
 0x26f   :  { %609 = vsyncpa [#allocation5], 1 }
 0x270   :  { %611 = vsyncpa [#allocation5 + $0x1], 1 }
 0x271   :  { %612 = vsyncpa [#allocation8], 1 }
 0x272   :  { %613 = vsyncpa [#allocation6], 1 }
 0x273   :  { %615 = vsyncpa [#allocation6 + $0x1], 1 }
 0x274   :  { %616 = vsyncpa [#allocation11], 1 }
 0x275   :  { %618 = vsyncpa [#allocation11 + $0x1], 1 }

</bundles_post_ra>
